<compile_context>
chip_gen: v5e
topology: v5e:2x2
jax: 0.10.0
libtpu: 0.0.40
codegen_flags: <defaults>
</compile_context>

<pallas_src>
import functools

import jax
import jax.numpy as jnp
from jax.experimental import pallas as pl
from jax.experimental.pallas import tpu as pltpu


def _gaussian_lstm_kernel(
    x_ref, w_emb_ref, b_emb_ref,
    w_gates_ref, b_gates_ref,
    w_head_ref, b_head_ref,
    eps_ref,
    out_ref,
    *, n_layers, hidden_size, output_size,
):
    H = hidden_size
    O = output_size

    # embed: Linear(input_size -> hidden).  bf16 x bf16 -> f32 accumulation.
    h = jnp.dot(x_ref[...], w_emb_ref[...],
                preferred_element_type=jnp.float32) + b_emb_ref[...]

    # LSTMCell stack.  h0 = c0 = 0 each call, so the w_hh matmul and the
    # forget-gate path are mathematically dead and have been removed; b_hh
    # survives only as an additive bias (pre-summed into b_gates on host).
    # Packed gate weights per layer: (H, 3H), gate order [i, g, o].
    for layer in range(n_layers):
        gates = jnp.dot(h.astype(jnp.bfloat16), w_gates_ref[layer],
                        preferred_element_type=jnp.float32) + b_gates_ref[layer]
        i_g = jax.nn.sigmoid(gates[:, 0 * H:1 * H])
        g_g = jnp.tanh(gates[:, 1 * H:2 * H])
        o_g = jax.nn.sigmoid(gates[:, 2 * H:3 * H])
        c = i_g * g_g                 # f_g * c0 == 0
        h = o_g * jnp.tanh(c)

    # fused mu / logvar head: one (H, 2*O) matmul instead of two skinny ones.
    head = jnp.dot(h.astype(jnp.bfloat16), w_head_ref[...],
                   preferred_element_type=jnp.float32) + b_head_ref[...]
    mu = head[:, :O]
    lv = head[:, O:]

    # reparameterize: z = eps * exp(0.5 * logvar) + mu
    z = eps_ref[...] * jnp.exp(0.5 * lv) + mu

    # single fused output tile [z | mu | logvar] -> one write-back DMA
    out_ref[:, 0 * O:1 * O] = z
    out_ref[:, 1 * O:2 * O] = mu
    out_ref[:, 2 * O:3 * O] = lv


def gaussian_lstm_forward(x, params, eps, *, n_layers, hidden_size, output_size):
    batch = x.shape[0]
    kernel = functools.partial(
        _gaussian_lstm_kernel,
        n_layers=n_layers, hidden_size=hidden_size, output_size=output_size)

    vmem = pl.BlockSpec(memory_space=pltpu.MemorySpace.VMEM)
    fused = pl.pallas_call(
        kernel,
        out_shape=jax.ShapeDtypeStruct((batch, 3 * output_size), jnp.float32),
        in_specs=[vmem] * 8,
        out_specs=vmem,
    )(
        x.astype(jnp.bfloat16),
        params["w_emb"], params["b_emb"],
        params["w_gates"], params["b_gates"],
        params["w_head"], params["b_head"],
        eps,
    )
    z = fused[:, 0 * output_size:1 * output_size]
    mu = fused[:, 1 * output_size:2 * output_size]
    lv = fused[:, 2 * output_size:3 * output_size]
    return z, mu, lv


def init_raw_params(key, input_size, hidden_size, output_size, n_layers):
    """PyTorch-like uniform init.  Weights stored (in, out); gate order [i,f,g,o]."""
    ks = jax.random.split(key, 10)
    ki = iter(ks)
    H = hidden_size

    def lin(k, fan_in, shape):
        bound = 1.0 / (fan_in ** 0.5)
        return jax.random.uniform(k, shape, jnp.float32, -bound, bound)

    return {
        "w_emb": lin(next(ki), input_size, (input_size, H)),
        "b_emb": lin(next(ki), input_size, (1, H)),
        "w_mu":  lin(next(ki), H, (H, output_size)),
        "b_mu":  lin(next(ki), H, (1, output_size)),
        "w_lv":  lin(next(ki), H, (H, output_size)),
        "b_lv":  lin(next(ki), H, (1, output_size)),
        "w_ih":  lin(next(ki), H, (n_layers, H, 4 * H)),
        "b_ih":  lin(next(ki), H, (n_layers, 1, 4 * H)),
        "w_hh":  lin(next(ki), H, (n_layers, H, 4 * H)),
        "b_hh":  lin(next(ki), H, (n_layers, 1, 4 * H)),
    }


def pack_params(raw, hidden_size):
    """Host-side packing: drop dead forget-gate columns, pre-sum biases,
    fuse the mu/logvar head, cast weights to bf16 (biases stay f32)."""
    H = hidden_size

    def igo(a):  # keep [i, g, o] blocks of the 4H gate axis
        return jnp.concatenate(
            [a[..., 0 * H:1 * H], a[..., 2 * H:3 * H], a[..., 3 * H:4 * H]], axis=-1)

    return {
        "w_emb": raw["w_emb"].astype(jnp.bfloat16),
        "b_emb": raw["b_emb"],
        "w_gates": igo(raw["w_ih"]).astype(jnp.bfloat16),      # (L, H, 3H)
        "b_gates": igo(raw["b_ih"] + raw["b_hh"]),             # (L, 1, 3H) f32
        "w_head": jnp.concatenate(
            [raw["w_mu"], raw["w_lv"]], axis=-1).astype(jnp.bfloat16),  # (H, 2*O)
        "b_head": jnp.concatenate([raw["b_mu"], raw["b_lv"]], axis=-1),  # (1, 2*O)
    }


def _reference_forward(x, raw, eps, *, n_layers, hidden_size):
    """Pure-JAX reference implementing the ORIGINAL module math (all 4 gates,
    w_hh against the zero state), with the same bf16-input / f32-accumulate
    matmul precision as the kernel."""
    H = hidden_size

    def mm(a, w):
        return jnp.dot(a.astype(jnp.bfloat16), w.astype(jnp.bfloat16),
                       preferred_element_type=jnp.float32)

    h_in = mm(x, raw["w_emb"]) + raw["b_emb"]
    h0 = jnp.zeros_like(h_in)
    c0 = jnp.zeros_like(h_in)
    for l in range(n_layers):
        gates = (mm(h_in, raw["w_ih"][l]) + raw["b_ih"][l]
                 + mm(h0, raw["w_hh"][l]) + raw["b_hh"][l])
        i_g = jax.nn.sigmoid(gates[:, 0 * H:1 * H])
        f_g = jax.nn.sigmoid(gates[:, 1 * H:2 * H])
        g_g = jnp.tanh(gates[:, 2 * H:3 * H])
        o_g = jax.nn.sigmoid(gates[:, 3 * H:4 * H])
        c = f_g * c0 + i_g * g_g
        h_in = o_g * jnp.tanh(c)
    mu = mm(h_in, raw["w_mu"]) + raw["b_mu"]
    lv = mm(h_in, raw["w_lv"]) + raw["b_lv"]
    z = eps * jnp.exp(0.5 * lv) + mu
    return z, mu, lv


if __name__ == "__main__":
    # Small shapes consistent with the module's forward:
    #   input  : (batch, input_size)
    #   hidden : hidden_size, n_layers LSTMCells
    #   output : (batch, output_size) for z, mu, logvar
    batch_size = 8          # fills the 8-sublane dim; scale M >=128 for throughput
    input_size = 16
    hidden_size = 32
    output_size = 8
    n_layers = 2

    root = jax.random.PRNGKey(0)
    k_param, k_x, k_eps = jax.random.split(root, 3)

    raw_params = init_raw_params(k_param, input_size, hidden_size, output_size, n_layers)
    packed_params = pack_params(raw_params, hidden_size)

    x = jax.random.normal(k_x, (batch_size, input_size), jnp.float32)
    # TODO(synk): reparameterization noise eps is drawn in plain JAX and passed
    # in; it could be generated in-kernel with pltpu.prng_seed + stateful_normal.
    eps = jax.random.normal(k_eps, (batch_size, output_size), jnp.float32)

    z, mu, logvar = gaussian_lstm_forward(
        x, packed_params, eps,
        n_layers=n_layers, hidden_size=hidden_size, output_size=output_size)
    jax.block_until_ready((z, mu, logvar))

    z_ref, mu_ref, lv_ref = _reference_forward(
        x, raw_params, eps, n_layers=n_layers, hidden_size=hidden_size)

    assert jnp.allclose(mu, mu_ref, atol=1e-3, rtol=1e-3)
    assert jnp.allclose(logvar, lv_ref, atol=1e-3, rtol=1e-3)
    assert jnp.allclose(z, z_ref, atol=1e-3, rtol=1e-3)

    print("KERNEL_OK")
</pallas_src>

<mosaic_0001>
module attributes {stable_mosaic.version = 11 : i64} {
  func.func @_gaussian_lstm_kernel(%arg0: memref<8x16xbf16, #tpu.memory_space<vmem>>, %arg1: memref<16x32xbf16, #tpu.memory_space<vmem>>, %arg2: memref<1x32xf32, #tpu.memory_space<vmem>>, %arg3: memref<2x32x96xbf16, #tpu.memory_space<vmem>>, %arg4: memref<2x1x96xf32, #tpu.memory_space<vmem>>, %arg5: memref<32x16xbf16, #tpu.memory_space<vmem>>, %arg6: memref<1x16xf32, #tpu.memory_space<vmem>>, %arg7: memref<8x8xf32, #tpu.memory_space<vmem>>, %arg8: memref<8x24xf32, #tpu.memory_space<vmem>>) attributes {dimension_semantics = [], scalar_prefetch = 0 : i64, scratch_operands = 0 : i64, tpu.core_type = #tpu.core_type<tc>} {
    %c0 = arith.constant 0 : index
    %c0_0 = arith.constant 0 : index
    %0 = vector.load %arg0[%c0, %c0_0] : memref<8x16xbf16, #tpu.memory_space<vmem>>, vector<8x16xbf16>
    %c0_1 = arith.constant 0 : index
    %c0_2 = arith.constant 0 : index
    %1 = vector.load %arg1[%c0_1, %c0_2] : memref<16x32xbf16, #tpu.memory_space<vmem>>, vector<16x32xbf16>
    %cst = arith.constant dense<0.000000e+00> : vector<8x32xf32>
    %2 = tpu.matmul %0, %1, %cst {dimension_numbers = #tpu.dot_dimension_numbers<[1], [0], [0], [1], [0, 0, 1, 1], [], []>} : vector<8x16xbf16>, vector<16x32xbf16>, vector<8x32xf32> -> vector<8x32xf32>
    %c0_3 = arith.constant 0 : index
    %c0_4 = arith.constant 0 : index
    %3 = vector.load %arg2[%c0_3, %c0_4] : memref<1x32xf32, #tpu.memory_space<vmem>>, vector<1x32xf32>
    %4 = vector.broadcast %3 : vector<1x32xf32> to vector<8x32xf32>
    %5 = arith.addf %2, %4 : vector<8x32xf32>
    %6 = arith.truncf %5 : vector<8x32xf32> to vector<8x32xbf16>
    %c0_5 = arith.constant 0 : index
    %c0_6 = arith.constant 0 : index
    %c0_7 = arith.constant 0 : index
    %7 = vector.load %arg3[%c0_5, %c0_6, %c0_7] : memref<2x32x96xbf16, #tpu.memory_space<vmem>>, vector<1x32x96xbf16>
    %8 = vector.shape_cast %7 : vector<1x32x96xbf16> to vector<32x96xbf16>
    %cst_8 = arith.constant dense<0.000000e+00> : vector<8x96xf32>
    %9 = tpu.matmul %6, %8, %cst_8 {dimension_numbers = #tpu.dot_dimension_numbers<[1], [0], [0], [1], [0, 0, 1, 1], [], []>} : vector<8x32xbf16>, vector<32x96xbf16>, vector<8x96xf32> -> vector<8x96xf32>
    %c0_9 = arith.constant 0 : index
    %c0_10 = arith.constant 0 : index
    %c0_11 = arith.constant 0 : index
    %10 = vector.load %arg4[%c0_9, %c0_10, %c0_11] : memref<2x1x96xf32, #tpu.memory_space<vmem>>, vector<1x1x96xf32>
    %11 = vector.shape_cast %10 : vector<1x1x96xf32> to vector<1x96xf32>
    %12 = vector.broadcast %11 : vector<1x96xf32> to vector<8x96xf32>
    %13 = arith.addf %9, %12 : vector<8x96xf32>
    %14 = vector.extract_strided_slice %13 {offsets = [0, 0], sizes = [8, 32], strides = [1, 1]} : vector<8x96xf32> to vector<8x32xf32>
    %15 = arith.negf %14 : vector<8x32xf32>
    %16 = math.exp %15 : vector<8x32xf32>
    %cst_12 = arith.constant 1.000000e+00 : f32
    %17 = vector.broadcast %cst_12 : f32 to vector<8x32xf32>
    %18 = arith.addf %17, %16 : vector<8x32xf32>
    %19 = arith.divf %17, %18 : vector<8x32xf32>
    %20 = vector.extract_strided_slice %13 {offsets = [0, 32], sizes = [8, 32], strides = [1, 1]} : vector<8x96xf32> to vector<8x32xf32>
    %21 = math.tanh %20 : vector<8x32xf32>
    %22 = vector.extract_strided_slice %13 {offsets = [0, 64], sizes = [8, 32], strides = [1, 1]} : vector<8x96xf32> to vector<8x32xf32>
    %23 = arith.negf %22 : vector<8x32xf32>
    %24 = math.exp %23 : vector<8x32xf32>
    %cst_13 = arith.constant 1.000000e+00 : f32
    %25 = vector.broadcast %cst_13 : f32 to vector<8x32xf32>
    %26 = arith.addf %25, %24 : vector<8x32xf32>
    %27 = arith.divf %25, %26 : vector<8x32xf32>
    %28 = arith.mulf %19, %21 : vector<8x32xf32>
    %29 = math.tanh %28 : vector<8x32xf32>
    %30 = arith.mulf %27, %29 : vector<8x32xf32>
    %31 = arith.truncf %30 : vector<8x32xf32> to vector<8x32xbf16>
    %c1 = arith.constant 1 : index
    %c0_14 = arith.constant 0 : index
    %c0_15 = arith.constant 0 : index
    %32 = vector.load %arg3[%c1, %c0_14, %c0_15] : memref<2x32x96xbf16, #tpu.memory_space<vmem>>, vector<1x32x96xbf16>
    %33 = vector.shape_cast %32 : vector<1x32x96xbf16> to vector<32x96xbf16>
    %cst_16 = arith.constant dense<0.000000e+00> : vector<8x96xf32>
    %34 = tpu.matmul %31, %33, %cst_16 {dimension_numbers = #tpu.dot_dimension_numbers<[1], [0], [0], [1], [0, 0, 1, 1], [], []>} : vector<8x32xbf16>, vector<32x96xbf16>, vector<8x96xf32> -> vector<8x96xf32>
    %c1_17 = arith.constant 1 : index
    %c0_18 = arith.constant 0 : index
    %c0_19 = arith.constant 0 : index
    %35 = vector.load %arg4[%c1_17, %c0_18, %c0_19] : memref<2x1x96xf32, #tpu.memory_space<vmem>>, vector<1x1x96xf32>
    %36 = vector.shape_cast %35 : vector<1x1x96xf32> to vector<1x96xf32>
    %37 = vector.broadcast %36 : vector<1x96xf32> to vector<8x96xf32>
    %38 = arith.addf %34, %37 : vector<8x96xf32>
    %39 = vector.extract_strided_slice %38 {offsets = [0, 0], sizes = [8, 32], strides = [1, 1]} : vector<8x96xf32> to vector<8x32xf32>
    %40 = arith.negf %39 : vector<8x32xf32>
    %41 = math.exp %40 : vector<8x32xf32>
    %cst_20 = arith.constant 1.000000e+00 : f32
    %42 = vector.broadcast %cst_20 : f32 to vector<8x32xf32>
    %43 = arith.addf %42, %41 : vector<8x32xf32>
    %44 = arith.divf %42, %43 : vector<8x32xf32>
    %45 = vector.extract_strided_slice %38 {offsets = [0, 32], sizes = [8, 32], strides = [1, 1]} : vector<8x96xf32> to vector<8x32xf32>
    %46 = math.tanh %45 : vector<8x32xf32>
    %47 = vector.extract_strided_slice %38 {offsets = [0, 64], sizes = [8, 32], strides = [1, 1]} : vector<8x96xf32> to vector<8x32xf32>
    %48 = arith.negf %47 : vector<8x32xf32>
    %49 = math.exp %48 : vector<8x32xf32>
    %cst_21 = arith.constant 1.000000e+00 : f32
    %50 = vector.broadcast %cst_21 : f32 to vector<8x32xf32>
    %51 = arith.addf %50, %49 : vector<8x32xf32>
    %52 = arith.divf %50, %51 : vector<8x32xf32>
    %53 = arith.mulf %44, %46 : vector<8x32xf32>
    %54 = math.tanh %53 : vector<8x32xf32>
    %55 = arith.mulf %52, %54 : vector<8x32xf32>
    %56 = arith.truncf %55 : vector<8x32xf32> to vector<8x32xbf16>
    %c0_22 = arith.constant 0 : index
    %c0_23 = arith.constant 0 : index
    %57 = vector.load %arg5[%c0_22, %c0_23] : memref<32x16xbf16, #tpu.memory_space<vmem>>, vector<32x16xbf16>
    %cst_24 = arith.constant dense<0.000000e+00> : vector<8x16xf32>
    %58 = tpu.matmul %56, %57, %cst_24 {dimension_numbers = #tpu.dot_dimension_numbers<[1], [0], [0], [1], [0, 0, 1, 1], [], []>} : vector<8x32xbf16>, vector<32x16xbf16>, vector<8x16xf32> -> vector<8x16xf32>
    %c0_25 = arith.constant 0 : index
    %c0_26 = arith.constant 0 : index
    %59 = vector.load %arg6[%c0_25, %c0_26] : memref<1x16xf32, #tpu.memory_space<vmem>>, vector<1x16xf32>
    %60 = vector.broadcast %59 : vector<1x16xf32> to vector<8x16xf32>
    %61 = arith.addf %58, %60 : vector<8x16xf32>
    %62 = vector.extract_strided_slice %61 {offsets = [0, 0], sizes = [8, 8], strides = [1, 1]} : vector<8x16xf32> to vector<8x8xf32>
    %63 = vector.extract_strided_slice %61 {offsets = [0, 8], sizes = [8, 8], strides = [1, 1]} : vector<8x16xf32> to vector<8x8xf32>
    %c0_27 = arith.constant 0 : index
    %c0_28 = arith.constant 0 : index
    %64 = vector.load %arg7[%c0_27, %c0_28] : memref<8x8xf32, #tpu.memory_space<vmem>>, vector<8x8xf32>
    %cst_29 = arith.constant 5.000000e-01 : f32
    %65 = vector.broadcast %cst_29 : f32 to vector<8x8xf32>
    %66 = arith.mulf %65, %63 : vector<8x8xf32>
    %67 = math.exp %66 : vector<8x8xf32>
    %68 = arith.mulf %64, %67 : vector<8x8xf32>
    %69 = arith.addf %68, %62 : vector<8x8xf32>
    %c0_30 = arith.constant 0 : index
    %c0_31 = arith.constant 0 : index
    %70 = vector.load %arg8[%c0_30, %c0_31] : memref<8x24xf32, #tpu.memory_space<vmem>>, vector<8x8xf32>
    tpu.vector_store %arg8[%c0_30, %c0_31], %69 {strides = array<i32>} : memref<8x24xf32, #tpu.memory_space<vmem>>, vector<8x8xf32>,
    %c0_32 = arith.constant 0 : index
    %c8 = arith.constant 8 : index
    %71 = vector.load %arg8[%c0_32, %c8] : memref<8x24xf32, #tpu.memory_space<vmem>>, vector<8x8xf32>
    tpu.vector_store %arg8[%c0_32, %c8], %62 {strides = array<i32>} : memref<8x24xf32, #tpu.memory_space<vmem>>, vector<8x8xf32>,
    %c0_33 = arith.constant 0 : index
    %c16 = arith.constant 16 : index
    %72 = vector.load %arg8[%c0_33, %c16] : memref<8x24xf32, #tpu.memory_space<vmem>>, vector<8x8xf32>
    tpu.vector_store %arg8[%c0_33, %c16], %63 {strides = array<i32>} : memref<8x24xf32, #tpu.memory_space<vmem>>, vector<8x8xf32>,
    return
  }
}

</mosaic_0001>

<bundles_post_ra>
// kernel: tpu_custom_call.1
= control target key start
LH: loop header
LB: loop body
LE: loop exit
PB: predicated region body
PF: predicated region fallthrough
CT: control target
= control target key end

     0   :  { %13 = vsyncpa [#allocation3], 0  ;;  %s515_s0 = inlined_call_operand.vmem [shape: bf16[8,16], index: 0, kind: input, shape index: {}]   ;;  %s516_s1 = inlined_call_operand.vmem [shape: bf16[16,32], index: 1, kind: input, shape index: {}]   ;;  %s517_s2 = inlined_call_operand.vmem [shape: f32[1,32], index: 2, kind: input, shape index: {}]   ;;  %s518_s3 = inlined_call_operand.hbm [shape: bf16[2,32,96], index: 3, kind: input, shape index: {}]   ;;  %s519_s4 = inlined_call_operand.vmem [shape: f32[2,1,96], index: 4, kind: input, shape index: {}]   ;;  %s520_s5 = inlined_call_operand.vmem [shape: bf16[32,16], index: 5, kind: input, shape index: {}]   ;;  %s521_s6 = inlined_call_operand.vmem [shape: f32[1,16], index: 6, kind: input, shape index: {}]   ;;  %s522_s7 = inlined_call_operand.vmem [shape: f32[8,8], index: 7, kind: input, shape index: {}]   ;;  %s523_s8 = inlined_call_operand.hbm [shape: f32[8,24], index: 8, kind: output, shape index: {}]  }
   0x1   :  { %14 = vsyncpa [#allocation4], 0  ;;  %s25_s29 = sshll.u32 %s518_s3, 4  ;;  %s419_s30 = smov [#allocation2]   ;;  %s26_s29 = int_to_ptr.hbm [resolvable:$true] %s25_s29 }
   0x2   :  { %s27_s9 = sshll.u32 %s419_s30, 4  ;;  %s420_s10 = smov 64   ;;  %s28_s9 = int_to_ptr.vmem [resolvable:$true] %s27_s9 }
   0x3   :  { %s421_s11 = smov 4  }
   0x4   :  { %33 = dma.hbm_to_vmem [thread:$0]  %s26_s29, 512, %s28_s9, [#allocation3], %s420_s10, %s420_s10, %s421_s11  }
   0x5   :  { %415 = dma.done.wait [#allocation3], 512  }
   0x6   :  { %416 = vsyncadd [#allocation3], 4294966784  ;;  %v331_v0 = vld [vmem:[%s516_s1] sm:$0xff]  ;;  %v333_v1 = vld [vmem:[#allocation2 + $0x8] sm:$0xff]  ;;  %vm60_vm0 = vcmask 130048   ;;  %vm98_vm1 = vcmask 261120  }
   0x7   :  { %71 = vmatpush.bf16.msra.mxu0 %v331_v0  ;;  %v47_v2 = vld [vmem:[%s515_s0] sm:$0xf]  ;;  %108 = vmatpush.bf16.msra.mxu1 %v333_v1  ;;  %s422_s0 = smov 96   ;;  %v335_v30 = vld [vmem:[#allocation2 + $0x18] sm:$0xff]  ;;  %v334_v31 = vld [vmem:[#allocation2 + $0x10] sm:$0xff]  ;;  %s423_s24 = smov 8  }
   0x8   :  { %v332_v3 = vld [vmem:[#allocation2] sm:$0xff]  ;;  %181 = vmatpush.bf16.msra.mxu2 %v335_v30  ;;  %v337_v57 = vld [vmem:[%s520_s5 + $0x8] sm:$0xff]  ;;  %vm269_vm10 = vcmask 64512   ;;  %s425_s27 = smov [#allocation5]   ;;  %s286_s30 = sshll.u32 %s523_s8, 4  ;;  %vm275_vm11 = vcmask 130112   ;;  %s287_s30 = int_to_ptr.hbm [resolvable:$true] %s286_s30 }
   0x9   :  { %v345_v4 = vld [vmem:[%s517_s2] ss:$0 sm:$0xff]  ;;  %v347_v36 = vld [vmem:[%s519_s4 + $0x1] ss:$0 sm:$0xff]  ;;  %252 = vmatpush.bf16.msra.mxu3 %v337_v57  ;;  %vm277_vm12 = vcmask 195712  }
   0xa   :  { %300 = vmatmul.msk.bf16.vlgmr.msra.gmra.mxu0 %vm60_vm0, %v47_v2  ;;  %v346_v9 = vld [vmem:[%s519_s4] ss:$0 sm:$0xff] }
   0xb   :  { %109 = vmatpush.bf16.msra.mxu1 %v332_v3  ;;  %v336_v58 = vld [vmem:[%s520_s5] sm:$0xff]  ;;  %s424_s5 = smov 120  }
   0xc   :  { %182 = vmatpush.bf16.msra.mxu2 %v334_v31  ;;  %v348_v63 = vld [vmem:[%s521_s6] ss:$0 sm:$0xff]  ;;  %s284_s6 = sshll.u32 %s425_s27, 4  ;;  %s285_s6 = int_to_ptr.vmem [resolvable:$true] %s284_s6 }
   0xd   :  { %253 = vmatpush.bf16.msra.mxu3 %v336_v58 }
  0x87   :  { %v73_v5 = vpop.f32.mrf.mxu0 }
  0x88   :  { %v74_v6 = vadd.f32 %v345_v4, %v73_v5 }
  0x8a   :  { %v77_v7 = vpack.c.bf16 %v74_v6, %v74_v6  ;;  %v259_v6 = vld [vmem:[%s522_s7] sm:$0xff] }
  0x8c   :  { %309 = vmatmul.msk.bf16.vlgmr.msra.gmra.mxu1 %vm98_vm1, %v77_v7 }
  0x8f   :  { %v75_v8 = vpop.f32.mrf.mxu0 }
 0x109   :  { %v111_v10 = vpop.f32.mrf.mxu1 }
 0x10a   :  { %v112_v11 = vadd.f32 %v346_v9, %v111_v10 }
 0x10c   :  { %349 = vtanh.f32 %v112_v11  ;;  %v310_v14 = vmul.f32 -1.442695, %v112_v11 }
 0x10e   :  { %351 = vpow2.f32 %v310_v14 }
 0x111   :  { %v113_v12 = vpop.f32.mrf.mxu1 }
 0x112   :  { %v350_v13 = vpop.eup %349 }
 0x113   :  { %136 = vrot.lane.b32.xlu0 %v350_v13, %s422_s0 }
 0x114   :  { %v352_v15 = vpop.eup %351 }
 0x115   :  { %v118_v16 = vadd.f32 1.0, %v352_v15 }
 0x117   :  { %353 = vrcp.f32 %v118_v16  ;;  %v130_v22 = vand.u32 2147483648, %v118_v16  ;;  %vm124_vm3 = vweird.f32 %v118_v16  ;;  %v128_v23 = vand.u32 2147483647, %v118_v16 }
 0x119   :  { %v131_v25 = vor.u32 1.1754944e-38, %v130_v22  ;;  %vm129_vm5 = vcmp.eq.f32.partialorder %v128_v23, 8.507059e+37 }
 0x11d   :  { %v354_v17 = vpop.eup %353 }
 0x11e   :  { %v120_v18 = vmul.f32 %v354_v17, %v118_v16  ;;  %vm125_vm2 = vweird.f32 %v354_v17 }
 0x11f   :  { %vm126_vm4 = vmor %vm124_vm3, %vm125_vm2 }
 0x120   :  { %v121_v19 = vsub.f32 1.0, %v120_v18 }
 0x122   :  { %v122_v20 = vmul.f32 %v354_v17, %v121_v19 }
 0x124   :  { %v123_v21 = vadd.f32 %v354_v17, %v122_v20 }
 0x126   :  { %v127_v24 = vsel %vm126_vm4, %v354_v17, %v123_v21 }
 0x127   :  { %v132_v27 = vsel %vm129_vm5, %v131_v25, %v127_v24 }
 0x185   :  { %v137_v26 = vpop.permute.xlu0 %136 }
 0x186   :  { %v139_v28 = vmul.f32 %v137_v26, %v132_v27 }
 0x188   :  { %355 = vtanh.f32 %v139_v28 }
 0x18e   :  { %v356_v29 = vpop.eup %355 }
 0x18f   :  { %142 = vrot.lane.b32.xlu0 %v356_v29, %s420_s10 }
 0x201   :  { %v143_v32 = vpop.permute.xlu0 %142 }
 0x202   :  { %v145_v33 = vmul.f32 %v143_v32, %v132_v27 }
 0x204   :  { %v146_v34 = vpack.c.bf16 %v145_v33, %v145_v33 }
 0x206   :  { %158 = vrot.lane.b32.xlu1 %v146_v34, %s420_s10 }
 0x278   :  { %v159_v35 = vpop.permute.xlu1 %158 }
 0x279   :  { %320 = vmatmul.msk.bf16.vlgmr.msra.gmra.mxu2 %vm98_vm1, %v159_v35 }
 0x2fc   :  { %v184_v37 = vpop.f32.mrf.mxu2 }
 0x2fd   :  { %v185_v38 = vadd.f32 %v347_v36, %v184_v37 }
 0x2ff   :  { %357 = vtanh.f32 %v185_v38  ;;  %v321_v41 = vmul.f32 -1.442695, %v185_v38 }
 0x301   :  { %359 = vpow2.f32 %v321_v41 }
 0x304   :  { %v186_v39 = vpop.f32.mrf.mxu2 }
 0x305   :  { %v358_v40 = vpop.eup %357 }
 0x306   :  { %209 = vrot.lane.b32.xlu1 %v358_v40, %s422_s0 }
 0x307   :  { %v360_v42 = vpop.eup %359 }
 0x308   :  { %v191_v43 = vadd.f32 1.0, %v360_v42 }
 0x30a   :  { %361 = vrcp.f32 %v191_v43  ;;  %v203_v49 = vand.u32 2147483648, %v191_v43  ;;  %vm197_vm7 = vweird.f32 %v191_v43  ;;  %v201_v50 = vand.u32 2147483647, %v191_v43 }
 0x30c   :  { %v204_v52 = vor.u32 1.1754944e-38, %v203_v49  ;;  %vm202_vm9 = vcmp.eq.f32.partialorder %v201_v50, 8.507059e+37 }
 0x310   :  { %v362_v44 = vpop.eup %361 }
 0x311   :  { %v193_v45 = vmul.f32 %v362_v44, %v191_v43  ;;  %vm198_vm6 = vweird.f32 %v362_v44 }
 0x312   :  { %vm199_vm8 = vmor %vm197_vm7, %vm198_vm6 }
 0x313   :  { %v194_v46 = vsub.f32 1.0, %v193_v45 }
 0x315   :  { %v195_v47 = vmul.f32 %v362_v44, %v194_v46 }
 0x317   :  { %v196_v48 = vadd.f32 %v362_v44, %v195_v47 }
 0x319   :  { %v200_v51 = vsel %vm199_vm8, %v362_v44, %v196_v48 }
 0x31a   :  { %v205_v54 = vsel %vm202_vm9, %v204_v52, %v200_v51 }
 0x378   :  { %v210_v53 = vpop.permute.xlu1 %209 }
 0x379   :  { %v212_v55 = vmul.f32 %v210_v53, %v205_v54 }
 0x37b   :  { %363 = vtanh.f32 %v212_v55 }
 0x381   :  { %v364_v56 = vpop.eup %363 }
 0x382   :  { %215 = vrot.lane.b32.xlu2 %v364_v56, %s420_s10 }
 0x3dc   :  { %v216_v59 = vpop.permute.xlu2 %215 }
 0x3dd   :  { %v218_v60 = vmul.f32 %v216_v59, %v205_v54 }
 0x3df   :  { %v219_v61 = vpack.c.bf16 %v218_v60, %v218_v60 }
 0x3e1   :  { %229 = vrot.lane.b32.xlu2 %v219_v61, %s420_s10 }
 0x43b   :  { %v230_v62 = vpop.permute.xlu2 %229 }
 0x43c   :  { %330 = vmatmul.msk.bf16.vlgmr.msra.gmra.mxu3 %vm98_vm1, %v230_v62 }
 0x4bf   :  { %v255_v0 = vpop.f32.mrf.mxu3 }
 0x4c0   :  { %v256_v1 = vadd.f32 %v348_v63, %v255_v0 }
 0x4c2   :  { %v260_v2 = vmul.f32 0.5, %v256_v1  ;;  %272 = vrot.lane.b32.xlu1 %v256_v1, %s423_s24 }
 0x4c4   :  { %v261_v3 = vmul.f32 1.442695, %v260_v2 }
 0x4c6   :  { %365 = vpow2.f32 %v261_v3 }
 0x4c7   :  { %v257_v4 = vpop.f32.mrf.mxu3 }
 0x4cc   :  { %v366_v5 = vpop.eup %365 }
 0x4cd   :  { %264 = vrot.lane.b32.xlu0 %v366_v5, %s424_s5 }
 0x534   :  { %v273_v10 = vpop.permute.xlu1 %272 }
 0x53f   :  { %v265_v7 = vpop.permute.xlu0 %264 }
 0x540   :  { %v267_v8 = vmul.f32 %v265_v7, %v259_v6 }
 0x542   :  { %v268_v9 = vadd.f32 %v267_v8, %v256_v1 }
 0x544   :  { %270 = vst.msk [vmem:[#allocation5] sm:$0xff] %vm269_vm10, %v268_v9 }
 0x545   :  { %276 = vst.msk [vmem:[#allocation5] sm:$0xff] %vm275_vm11, %v273_v10 }
 0x546   :  { %278 = vst.msk [vmem:[#allocation5] sm:$0xff] %vm277_vm12, %v273_v10 }
 0x547   :  { %289 = dma.vmem_to_hbm [thread:$0]  %s285_s6, 128, %s287_s30, [#allocation4]  }
 0x548   :  { %417 = dma.done.wait [#allocation4], 128  }
 0x549   :  { %418 = vsyncadd [#allocation4], 4294967168 }
 0x54a   :  { %294 = vsyncpa [#allocation3], 1 }
 0x54b   :  { %295 = vsyncpa [#allocation4], 1 }

</bundles_post_ra>
